<compile_context>
chip_gen: v6e
topology: v6e:2x2x1
jax: 0.10.0
libtpu: 0.0.40
codegen_flags: <defaults>
</compile_context>

<pallas_src>
import jax
import jax.numpy as jnp
from jax.experimental import pallas as pl
from jax.experimental.pallas import tpu as pltpu


def _conv1x1_softmax_kernel(x_ref, w_ref, b_ref, o_ref):
    # x_ref: (C_in, TS)   w_ref: (C_out, C_in)   b_ref: (C_out, 1)
    # o_ref: (C_out, TS)
    x = x_ref[...].astype(jnp.float32)          # (C_in, TS)
    w = w_ref[...].astype(jnp.float32)          # (C_out, C_in)
    b = b_ref[...].astype(jnp.float32)          # (C_out, 1)

    # 1x1x1 conv == per-voxel matmul over channels; spatial stays on lanes.
    logits = jnp.dot(
        w, x,
        preferred_element_type=jnp.float32,
        precision=jax.lax.Precision.HIGHEST,
    ) + b                                        # (C_out, TS)

    # Softmax over the channel axis (sublanes) -- cheap C_out-row reduce.
    m = jnp.max(logits, axis=0, keepdims=True)
    e = jnp.exp(logits - m)
    denom = jnp.sum(e, axis=0, keepdims=True)
    # Exact normalization: memory-bound kernel, exact divide is free and keeps
    # softmax rows summing to 1 (the approx EUP reciprocal failed tolerance).
    o_ref[...] = (e / denom).astype(o_ref.dtype)


def _choose_spatial_tile(s_total: int, n: int, max_tile_s: int) -> int:
    """Pick the lane (spatial) tile size.

    Preferences (priority order):
      * multiple of 128, or the full axis, so stores stay lane-dense;
      * total grid steps n * grid_s even so v7x's two TensorCores both get
        balanced work (no effect on 1-TC v5e / v6e);
      * tile divides the spatial axis (no mostly-padding ragged final block);
      * as large as possible (<= max_tile_s) to amortize per-step overhead.
    """
    if s_total <= 128:
        return s_total                           # one tiny block == full axis
    chunks = -(-s_total // 128)                  # available 128-lane chunks
    cap = max(1, min(max_tile_s // 128, chunks))

    def grid_s(c):
        return -(-chunks // c)

    def score(c):
        total_steps = n * grid_s(c)
        even = (total_steps % 2 == 0)
        divides = (chunks % c == 0)
        return (even, divides, c)

    best = max(range(1, cap + 1), key=score)
    return s_total if best == chunks else best * 128


def up_conv_last_forward(x_ncdhw, weight, bias, *, max_tile_s=32768):
    """x_ncdhw: (N, 48, D, H, W); weight: (ch_out, 48[,1,1,1]); bias: (ch_out,)."""
    n, c_in, d, h, w = x_ncdhw.shape
    c_out = weight.shape[0]
    s_total = d * h * w

    # Free (contiguous) reshape: channels stay at dim 1, spatial flattened last.
    x3 = x_ncdhw.reshape(n, c_in, s_total)
    # Keep the tiny conv parameters in f32 regardless of activation dtype.
    w2 = weight.reshape(c_out, c_in).astype(jnp.float32)
    b2 = bias.reshape(c_out, 1).astype(jnp.float32)

    tile_s = _choose_spatial_tile(s_total, n, max_tile_s)
    grid_s = pl.cdiv(s_total, tile_s)
    grid = (n, grid_s)

    # Explicit VMEM budget: double-buffered x + out blocks plus slack, so big
    # tiles don't silently trip the scoped-VMEM defaults (16 MiB on v5e).
    itemsize = jnp.dtype(x3.dtype).itemsize
    lanes_padded = -(-tile_s // 128) * 128
    in_sublanes = -(-c_in // 8) * 8
    out_sublanes = -(-c_out // 8) * 8
    x_block_bytes = in_sublanes * lanes_padded * itemsize
    o_block_bytes = out_sublanes * lanes_padded * itemsize
    vmem_limit_bytes = int(
        min(60 << 20, max(16 << 20, 2 * (x_block_bytes + o_block_bytes) + (4 << 20)))
    )

    cost = pl.CostEstimate(
        flops=2 * n * s_total * c_in * c_out,
        transcendentals=n * s_total * c_out,
        bytes_accessed=n * s_total * (c_in + c_out) * itemsize
        + c_out * (c_in + 1) * 4,
    )

    out3 = pl.pallas_call(
        _conv1x1_softmax_kernel,
        out_shape=jax.ShapeDtypeStruct((n, c_out, s_total), x3.dtype),
        grid_spec=pltpu.PrefetchScalarGridSpec(
            num_scalar_prefetch=0,
            grid=grid,
            in_specs=[
                # batch dim squeezed; (C_in, TS) block, lane-dense.
                pl.BlockSpec((None, c_in, tile_s), lambda i, j: (i, 0, j)),
                # weight/bias: constant block index -> fetched once, resident.
                pl.BlockSpec((c_out, c_in), lambda i, j: (0, 0)),
                pl.BlockSpec((c_out, 1), lambda i, j: (0, 0)),
            ],
            out_specs=pl.BlockSpec((None, c_out, tile_s), lambda i, j: (i, 0, j)),
        ),
        compiler_params=pltpu.CompilerParams(
            dimension_semantics=("parallel", "parallel"),
            vmem_limit_bytes=vmem_limit_bytes,
        ),
        cost_estimate=cost,
    )(x3, w2, b2)

    return out3.reshape(n, c_out, d, h, w)


if __name__ == "__main__":
    key = jax.random.PRNGKey(0)
    k_x, k_w, k_b = jax.random.split(key, 3)

    # Shapes implied by the module: input channels fixed at 48, pick ch_out=4.
    N, C_IN, D, H, W = 2, 48, 4, 8, 8
    CH_OUT = 4

    x = jax.random.normal(k_x, (N, C_IN, D, H, W), dtype=jnp.float32)
    # Conv3d(48, ch_out, k=1) parameters with the 1x1x1 kernel dims squeezed.
    weight = jax.random.normal(k_w, (CH_OUT, C_IN), dtype=jnp.float32) * 0.1
    bias = jax.random.normal(k_b, (CH_OUT,), dtype=jnp.float32) * 0.1

    out = up_conv_last_forward(x, weight, bias)
    out = jax.block_until_ready(out)

    # Reference: nn.Softmax() with no dim on a 5-D tensor softmaxes over dim=1
    # (channels). Use highest-precision matmul to match the kernel's exact path.
    logits_ref = (
        jnp.einsum("ncdhw,oc->nodhw", x, weight, precision="highest")
        + bias[None, :, None, None, None]
    )
    ref = jax.nn.softmax(logits_ref, axis=1)
    assert out.shape == (N, CH_OUT, D, H, W)
    assert jnp.allclose(out, ref, atol=1e-4, rtol=1e-4)

    print("KERNEL_OK")
</pallas_src>

<mosaic_0001>
module attributes {stable_mosaic.version = 11 : i64} {
  func.func @_conv1x1_softmax_kernel(%arg0: i32, %arg1: i32, %arg2: memref<1x48x256xf32, #tpu.memory_space<vmem>>, %arg3: memref<4x48xf32, #tpu.memory_space<vmem>>, %arg4: memref<4x1xf32, #tpu.memory_space<vmem>>, %arg5: memref<1x4x256xf32, #tpu.memory_space<vmem>>) attributes {dimension_semantics = [#tpu.dimension_semantics<parallel>, #tpu.dimension_semantics<parallel>], iteration_bounds = array<i64: 2, 1>, scalar_prefetch = 0 : i64, scratch_operands = 0 : i64, tpu.core_type = #tpu.core_type<tc>, window_params = [{transform_indices = @transform_0, window_bounds = array<i64: 1, 48, 256>}, {pipeline_mode = #tpu.pipeline_mode<synchronous>, transform_indices = @transform_1, window_bounds = array<i64: 4, 48>}, {pipeline_mode = #tpu.pipeline_mode<synchronous>, transform_indices = @transform_2, window_bounds = array<i64: 4, 1>}, {transform_indices = @transform_3, window_bounds = array<i64: 1, 4, 256>}]} {
    %c0 = arith.constant 0 : index
    %c0_0 = arith.constant 0 : index
    %c0_1 = arith.constant 0 : index
    %0 = vector.load %arg2[%c0, %c0_0, %c0_1] : memref<1x48x256xf32, #tpu.memory_space<vmem>>, vector<1x48x256xf32>
    %1 = vector.shape_cast %0 : vector<1x48x256xf32> to vector<48x256xf32>
    %c0_2 = arith.constant 0 : index
    %c0_3 = arith.constant 0 : index
    %2 = vector.load %arg3[%c0_2, %c0_3] : memref<4x48xf32, #tpu.memory_space<vmem>>, vector<4x48xf32>
    %c0_4 = arith.constant 0 : index
    %c0_5 = arith.constant 0 : index
    %3 = vector.load %arg4[%c0_4, %c0_5] : memref<4x1xf32, #tpu.memory_space<vmem>>, vector<4x1xf32>
    %cst = arith.constant dense<0.000000e+00> : vector<4x256xf32>
    %4 = tpu.matmul %2, %1, %cst {dimension_numbers = #tpu.dot_dimension_numbers<[1], [0], [0], [1], [0, 0, 1, 1], [], []>, precision = #tpu.contract_precision<fp32>} : vector<4x48xf32>, vector<48x256xf32>, vector<4x256xf32> -> vector<4x256xf32>
    %5 = vector.broadcast %3 : vector<4x1xf32> to vector<4x256xf32>
    %6 = arith.addf %4, %5 : vector<4x256xf32>
    %cst_6 = arith.constant dense<0xFF800000> : vector<256xf32>
    %7 = vector.multi_reduction <maximumf>, %6, %cst_6 [0] : vector<4x256xf32> to vector<256xf32>
    %8 = vector.shape_cast %7 : vector<256xf32> to vector<1x256xf32>
    %9 = vector.broadcast %8 : vector<1x256xf32> to vector<4x256xf32>
    %10 = arith.subf %6, %9 : vector<4x256xf32>
    %11 = math.exp %10 : vector<4x256xf32>
    %cst_7 = arith.constant dense<0.000000e+00> : vector<256xf32>
    %12 = vector.multi_reduction <add>, %11, %cst_7 [0] : vector<4x256xf32> to vector<256xf32>
    %13 = vector.shape_cast %12 : vector<256xf32> to vector<1x256xf32>
    %14 = vector.broadcast %13 : vector<1x256xf32> to vector<4x256xf32>
    %15 = arith.divf %11, %14 : vector<4x256xf32>
    %c0_8 = arith.constant 0 : index
    %c0_9 = arith.constant 0 : index
    %c0_10 = arith.constant 0 : index
    %16 = vector.load %arg5[%c0_8, %c0_9, %c0_10] : memref<1x4x256xf32, #tpu.memory_space<vmem>>, vector<1x4x256xf32>
    %17 = vector.shape_cast %16 : vector<1x4x256xf32> to vector<4x256xf32>
    %18 = vector.shape_cast %15 : vector<4x256xf32> to vector<1x4x256xf32>
    tpu.vector_store %arg5[%c0_8, %c0_9, %c0_10], %18 {strides = array<i32>} : memref<1x4x256xf32, #tpu.memory_space<vmem>>, vector<1x4x256xf32>,
    return
  }
  func.func @transform_0(%arg0: i32, %arg1: i32) -> (i32, i32, i32) {
    %c0_i32 = arith.constant 0 : i32
    %c0_i32_0 = arith.constant 0 : i32
    return %arg0, %c0_i32, %arg1 : i32, i32, i32
  }
  func.func @transform_1(%arg0: i32, %arg1: i32) -> (i32, i32) {
    %c0_i32 = arith.constant 0 : i32
    %c0_i32_0 = arith.constant 0 : i32
    %c0_i32_1 = arith.constant 0 : i32
    return %c0_i32, %c0_i32_0 : i32, i32
  }
  func.func @transform_2(%arg0: i32, %arg1: i32) -> (i32, i32) {
    %c0_i32 = arith.constant 0 : i32
    %c0_i32_0 = arith.constant 0 : i32
    %c0_i32_1 = arith.constant 0 : i32
    return %c0_i32, %c0_i32_0 : i32, i32
  }
  func.func @transform_3(%arg0: i32, %arg1: i32) -> (i32, i32, i32) {
    %c0_i32 = arith.constant 0 : i32
    %c0_i32_0 = arith.constant 0 : i32
    return %arg0, %c0_i32, %arg1 : i32, i32, i32
  }
}

</mosaic_0001>

<bundles_post_ra>
// kernel: tpu_custom_call.1
= control target key start
LH: loop header
LB: loop body
LE: loop exit
PB: predicated region body
PF: predicated region fallthrough
CT: control target
= control target key end

     0   :  { %8 = vsyncpa [#allocation3], 0  ;;  %s1542_s0 = inlined_call_operand.hbm [shape: f32[2,48,256], index: 0, kind: input, shape index: {}]   ;;  %s1543_s1 = inlined_call_operand.vmem [shape: f32[4,48], index: 1, kind: input, shape index: {}]   ;;  %s1544_s2 = inlined_call_operand.vmem [shape: f32[4,1], index: 2, kind: input, shape index: {}]   ;;  %s1545_s3 = inlined_call_operand.hbm [shape: f32[2,4,256], index: 3, kind: output, shape index: {}]  }
   0x1   :  { %10 = vsyncpa [#allocation3 + $0x1], 0 }
   0x2   :  { %11 = vsyncpa [#allocation4], 0 }
   0x3   :  { %13 = vsyncpa [#allocation4 + $0x1], 0  ;;  %s1199_s12 = smov 0   ;;  %s1201_s13 = smov 0  }
   0x4   :  { %s1203_s14 = smov 0   ;;  %s1205_s15 = smov 0  }
   0x5   :  { %s1207_s16 = smov 0   ;;  %s1209_s17 = smov 0  }
   0x6 LB: > { %s972_s18 = sadd.s32 4294967295, %s1171_s17   ;;  %s973_s19 = sadd.s32 4294967294, %s1171_s17   ;;  %s1171_s17 = sphi %s1209_s17, %s19_s17   ;;  %s1167_s16 = sphi %s1207_s16, %s1556_s16   ;;  %s1163_s15 = sphi %s1205_s15, %s1555_s15   ;;  %s1159_s14 = sphi %s1203_s14, %s1554_s14   ;;  %s1155_s13 = sphi %s1201_s13, %s1553_s13   ;;  %s1151_s12 = sphi %s1199_s12, %s1552_s12  }
   0x7   : > { %s31_s20 = sadd.s32 1, %s1167_s16  ;;  %s40_s21 = sadd.s32 1, %s1159_s14 }
   0x8   : > { %p33_p0 = scmp.ge.s32.totalorder %s31_s20, 2  ;;  %p47_p1 = scmp.ne.s32.totalorder %s1159_s14, %s1155_s13 }
   0x9   : > { %p48_p2 = scmp.eq.s32.totalorder %s1171_s17, 0  ;;  %p53_p3 = scmp.ne.s32.totalorder %s1155_s13, %s1151_s12 }
   0xa   : > { %s1558_s20 = smov (%p33_p0, %s31_s20), 0  ;;  %p54_p5 = scmp.eq.s32.totalorder %s972_s18, 0 }
   0xb   : > { %p1240_p4 = por %p48_p2, %p47_p1  ;;  %s35_s23 = ssub.s32 %s1167_s16, %s1558_s20 }
   0xc   : > { %p121_p6 = scmp.eq.s32.totalorder %s972_s18, 1  ;;  %p38_p7 = scmp.eq.s32.totalorder %s35_s23, 0 }
   0xd   : > { %p1246_p8 = por %p54_p5, %p53_p3  ;;  %p127_p10 = scmp.eq.s32.totalorder %s973_s19, 1 }
   0xe   : > { %p1250_p9 = por %p121_p6, %p47_p1  ;;  %p1000_p13 = scmp.lt.s32.totalorder %s1171_s17, 2 }
   0xf   : > { %s1255_s26 = scalar_select %p38_p7, %s1159_s14, %s40_s21  }
  0x10   : > { %p1257_p11 = por %p127_p10, %p53_p3  ;;  %s153_s28 = sand.u32 1, %s1159_s14  }
  0x11   : > { %s985_s29 = smul.u32 96, %s153_s28  ;;  %p1267_p0 = pnand %p1000_p13, %p1240_p4 }
  0x12   : > { %s986_s30 = smul.u32 1536, %s1167_s16  ;;  %p977_p1 = scmp.ge.s32.totalorder %s1171_s17, 1 }
  0x13   : > { %s157_s8 = scalar_lea.vmem [#allocation2], %s985_s29  ;;  %s154_s10 = scalar_lea.sflag [#allocation3], %s153_s28 }
  0x14   : > { %s165_s7 = scalar_lea.hbm %s1542_s0, %s986_s30  ;;  %s166_s9 = sshll.u32 %s157_s8, 4  ;;  %s167_s9 = int_to_ptr.vmem [resolvable:$true] %s166_s9 }
  0x15   : > { %p1065_p2 = pneg %p1267_p0  ;;  %s1076_s11 = scalar_lea.vmem %s167_s9, 1536 }
  0x16   : > { %p1077_p3 = scmp.ne.s32.totalorder %s167_s9, %s1076_s11  ;;  %s1173_s18 = smov [#allocation2]  }
  0x17   : > { %s1081_s19 = sshll.u32 %s1173_s18, 4  ;;  %s1082_s19 = int_to_ptr.vmem [resolvable:$false] %s1081_s19 }
  0x18   : > { %p1079_p5 = pnand %p1077_p3, %p1065_p2  ;;  %s1083_s21 = scalar_lea.vmem %s1082_s19, 3072 }
  0x19   : > { %p1084_p4 = scmp.lt.s32.totalorder %s167_s9, %s1082_s19  ;;  %p1085_p7 = scmp.lt.s32.totalorder %s1083_s21, %s1076_s11 }
  0x1a   : > { %p1080_p6 = pneg %p1079_p5 }
  0x1b   : > { %p1086_p10 = por %p1085_p7, %p1084_p4 }
  0x1d   : > { %p1087_p13 = pnand %p1086_p10, %p1080_p6 }
  0x1f   : > { %1090 = shalt.err (!%p1087_p13)
}
  0x20   : > { %s1174_s22 = smov 256   ;;  %s1175_s23 = smov 16  }
  0x21   : > { %995 = dma.hbm_to_vmem [thread:$0]  (!%p1267_p0), %s165_s7, 1536, %s167_s9, %s154_s10, %s1174_s22, %s1174_s22, %s1175_s23  }
  0x22   : > { %p174_p12 = scmp.lt.s32.totalorder %s1171_s17, 3 }
  0x24   : > { %p175_p2 = pnand %p977_p1, %p174_p12 }
  0x25   : > { %s1283_s28 = sand.u32 (!%p175_p2), 1, %s1155_s13  }
  0x26   : > { %178 = sbr.rel (%p175_p2) target bundleno = 367 (0x16f), region = 32  ;;  %s181_s30 = scalar_lea.sflag (!%p175_p2), [#allocation3], %s1283_s28 }
  0x27   : > { %s987_s29 = smul.u32 (!%p175_p2), 96, %s1283_s28 }
  0x29   : > { %s1287_s5 = scalar_lea.vmem (!%p175_p2), [#allocation2], %s987_s29 }
  0x2b   : > { %1142 = dma.done.wait (%p1246_p8), %s181_s30, 1536  }
  0x2c   : > { %1144 = vsyncadd (%p1246_p8), %s181_s30, 4294965760  ;;  %v1176_v0 = vmov 0.0   ;;  %v1177_v1 = vmov 0   ;;  %v220_v2 = vld [vmem:[%s1287_s5 + $0x58] sm:$0xff]  ;;  %v219_v3 = vld [vmem:[%s1287_s5 + $0x50] sm:$0xff]  ;;  %vm228_vm0 = vcmask 392192  }
  0x2d   : > { %308 = vmatprep.mubr.f32.mxu0 %v1176_v0  ;;  %444 = vmatprep.mubr.f32.mxu1 %v1176_v0  ;;  %v218_v4 = vld [vmem:[%s1287_s5 + $0x48] sm:$0xff]  ;;  %v1298_v5 = vand.u32 4294901760, %v220_v2  ;;  %v1300_v6 = vand.u32 4294901760, %v219_v3  ;;  %v217_v8 = vld [vmem:[%s1287_s5 + $0x40] sm:$0xff]  ;;  %v216_v9 = vld [vmem:[%s1287_s5 + $0x38] sm:$0xff]  ;;  %vm827_vm1 = vcmask 1043456  }
  0x2e   : > { %1054 = vset.pattern.permute.xlu0 %v1177_v1  ;;  %v1302_v7 = vand.u32 4294901760, %v218_v4  ;;  %v215_v10 = vld [vmem:[%s1287_s5 + $0x30] sm:$0xff]  ;;  %v1307_v11 = vand.u32 4294901760, %v217_v8  ;;  %v1309_v12 = vand.u32 4294901760, %v216_v9  ;;  %v214_v14 = vld [vmem:[%s1287_s5 + $0x28] sm:$0xff]  ;;  %v213_v15 = vld [vmem:[%s1287_s5 + $0x20] sm:$0xff] }
  0x2f   : > { %v1311_v13 = vand.u32 4294901760, %v215_v10  ;;  %v212_v16 = vld [vmem:[%s1287_s5 + $0x18] sm:$0xff]  ;;  %253 = vmatprep.subr.mxu0 %v1298_v5  ;;  %v1317_v17 = vand.u32 4294901760, %v214_v14  ;;  %v1319_v18 = vand.u32 4294901760, %v213_v15  ;;  %v1324_v20 = vsub.f32 %v220_v2, %v1298_v5  ;;  %v211_v21 = vld [vmem:[%s1287_s5 + $0x10] sm:$0xff]  ;;  %v210_v22 = vld [vmem:[%s1287_s5 + $0x8] sm:$0xff] }
  0x30   : > { %v1321_v19 = vand.u32 4294901760, %v212_v16  ;;  %v209_v23 = vld [vmem:[%s1287_s5] sm:$0xff]  ;;  %255 = vmatpush1.msra.mxu0 %v1300_v6  ;;  %v1330_v24 = vand.u32 4294901760, %v211_v21  ;;  %v1333_v25 = vsub.f32 %v219_v3, %v1300_v6  ;;  %v1335_v26 = vand.u32 4294901760, %v210_v22  ;;  %s978_s8 = sshll.u32 %s1283_s28, 3  ;;  %s984_s9 = sshll.u32 %s1163_s15, 7 }
  0x31   : > { %v1338_v27 = vsub.f32 %v218_v4, %v1302_v7  ;;  %v221_v28 = vld [vmem:[%s1543_s1] sm:$0xf]  ;;  %257 = vmatprep.subr.mxu0 %v1302_v7  ;;  %v342_v30 = vand.u32 4294901760, %v1324_v20  ;;  %v1348_v31 = vand.u32 4294901760, %v209_v23  ;;  %v1351_v32 = vsub.f32 %v217_v8, %v1307_v11  ;;  %s206_s10 = scalar_lea.vmem [#allocation5], %s978_s8  ;;  %s886_s21 = scalar_lea.hbm %s1545_s3, %s984_s9 }
  0x32   : > { %v222_v29 = vld [vmem:[%s1544_s2] sm:$0xf]  ;;  %v1354_v33 = vsub.f32 %v216_v9, %v1309_v12  ;;  %259 = vmatpush1.msra.mxu0 %v1307_v11  ;;  %v348_v34 = vand.u32 4294901760, %v1333_v25  ;;  %v230_v36 = vsel %vm228_vm0, %v221_v28, 0  ;;  %v1361_v37 = vsub.f32 %v215_v10, %v1311_v13  ;;  %s888_s11 = sshll.u32 %s206_s10, 4  ;;  %s872_s22 = scalar_lea.sflag [#allocation4], %s1283_s28  ;;  %s889_s11 = int_to_ptr.vmem [resolvable:$true] %s888_s11 }
  0x33   : > { %225 = vperm.xlu0 %1054, %v222_v29   ;;  %v354_v35 = vand.u32 4294901760, %v1338_v27  ;;  %261 = vmatprep.subr.mxu0 %v1309_v12  ;;  %v343_v38 = vsub.f32 %v1324_v20, %v342_v30  ;;  %v360_v39 = vand.u32 4294901760, %v1351_v32  ;;  %v1369_v41 = vand.u32 4294901760, %v230_v36  ;;  %s1091_s23 = scalar_lea.vmem %s889_s11, 128  ;;  %s1178_s29 = smov [#allocation5]  }
  0x34   : > { %v366_v40 = vand.u32 4294901760, %v1354_v33  ;;  %263 = vmatpush1.msra.mxu0 %v1311_v13  ;;  %v349_v42 = vsub.f32 %v1333_v25, %v348_v34  ;;  %v372_v44 = vand.u32 4294901760, %v1361_v37  ;;  %v1380_v45 = vsub.f32 %v214_v14, %v1317_v17  ;;  %p1092_p8 = scmp.ne.s32.totalorder %s889_s11, %s1091_s23  ;;  %s1095_s30 = sshll.u32 %s1178_s29, 4  ;;  %s1096_s30 = int_to_ptr.vmem [resolvable:$false] %s1095_s30 }
  0x35   : > { %v355_v43 = vsub.f32 %v1338_v27, %v354_v35  ;;  %265 = vmatprep.subr.mxu0 %v1317_v17  ;;  %v344_v46 = vand.u32 4294901760, %v343_v38  ;;  %v361_v47 = vsub.f32 %v1351_v32, %v360_v39  ;;  %v1390_v49 = vsub.f32 %v230_v36, %v1369_v41  ;;  %s1097_s15 = scalar_lea.vmem %s1096_s30, 256  ;;  %p1098_p1 = scmp.lt.s32.totalorder %s889_s11, %s1096_s30 }
  0x36   : > { %v367_v48 = vsub.f32 %v1354_v33, %v366_v40  ;;  %267 = vmatpush1.msra.mxu0 %v1319_v18  ;;  %v350_v50 = vand.u32 4294901760, %v349_v42  ;;  %v373_v52 = vsub.f32 %v1361_v37, %v372_v44  ;;  %v378_v53 = vand.u32 4294901760, %v1380_v45  ;;  %p1093_p12 = pnand %p1092_p8, %p1250_p9  ;;  %p1099_p3 = scmp.lt.s32.totalorder %s1097_s15, %s1091_s23 }
  0x37   : > { %v356_v51 = vand.u32 4294901760, %v355_v43  ;;  %269 = vmatprep.subr.mxu0 %v1321_v19  ;;  %345 = vmatprep.subr.mxu1 %v344_v46  ;;  %v362_v54 = vand.u32 4294901760, %v361_v47  ;;  %v311_v56 = vand.u32 4294901760, %v1390_v49  ;;  %v1400_v57 = vsub.f32 %v213_v15, %v1319_v18 }
  0x38   : > { %v368_v55 = vand.u32 4294901760, %v367_v48  ;;  %271 = vmatpush1.msra.mxu0 %v1330_v24  ;;  %351 = vmatpush1.msra.mxu1 %v350_v50  ;;  %v374_v58 = vand.u32 4294901760, %v373_v52  ;;  %v379_v59 = vsub.f32 %v1380_v45, %v378_v53  ;;  %v1407_v60 = vsub.f32 %v212_v16, %v1321_v19  ;;  %p1094_p0 = pneg %p1093_p12  ;;  %p1100_p5 = por %p1099_p3, %p1098_p1 }
  0x39   : > { %v1410_v61 = vsub.f32 %v211_v21, %v1330_v24  ;;  %273 = vmatprep.subr.mxu0 %v1335_v26  ;;  %357 = vmatprep.subr.mxu1 %v356_v51  ;;  %v312_v62 = vsub.f32 %v1390_v49, %v311_v56  ;;  %v384_v63 = vand.u32 4294901760, %v1400_v57  ;;  %v1418_v1 = vsub.f32 %v210_v22, %v1335_v26 }
  0x3a   : > { %v1421_v2 = vsub.f32 %v209_v23, %v1348_v31  ;;  %275 = vmatpush1.msra.mxu0 %v1348_v31  ;;  %363 = vmatpush1.msra.mxu1 %v362_v54  ;;  %v380_v3 = vand.u32 4294901760, %v379_v59  ;;  %v390_v4 = vand.u32 4294901760, %v1407_v60  ;;  %p1101_p6 = pnand %p1100_p5, %p1094_p0 }
  0x3b   : > { %v396_v8 = vand.u32 4294901760, %v1410_v61  ;;  %369 = vmatprep.subr.mxu1 %v368_v55  ;;  %474 = vmatprep.subr.mxu0 %v1324_v20  ;;  %v313_v9 = vand.u32 4294901760, %v312_v62  ;;  %v385_v10 = vsub.f32 %v1400_v57, %v384_v63  ;;  %v402_v14 = vand.u32 4294901760, %v1418_v1 }
  0x3c   : > { %v408_v15 = vand.u32 4294901760, %v1421_v2  ;;  %375 = vmatpush1.msra.mxu1 %v374_v58  ;;  %v391_v16 = vsub.f32 %v1407_v60, %v390_v4 }
  0x3d   : > { %v397_v21 = vsub.f32 %v1410_v61, %v396_v8  ;;  %314 = vmatmul.mubr.f32.vlgmr.msra.gmra.mxu0 %v313_v9  ;;  %381 = vmatprep.subr.mxu1 %v380_v3  ;;  %v386_v22 = vand.u32 4294901760, %v385_v10  ;;  %v403_v23 = vsub.f32 %v1418_v1, %v402_v14 }
  0x3e   : > { %v409_v28 = vsub.f32 %v1421_v2, %v408_v15  ;;  %477 = vmatpush1.msra.mxu0 %v1333_v25  ;;  %v392_v29 = vand.u32 4294901760, %v391_v16  ;;  %540 = vmatprep.mubr.f32.mxu0 %v1176_v0 }
  0x3f   : > { %v398_v36 = vand.u32 4294901760, %v397_v21  ;;  %480 = vmatprep.subr.mxu0 %v1338_v27  ;;  %387 = vmatpush1.msra.mxu1 %v386_v22  ;;  %v404_v38 = vand.u32 4294901760, %v403_v23 }
  0x40   : > { %v410_v42 = vand.u32 4294901760, %v409_v28  ;;  %483 = vmatpush1.msra.mxu0 %v1351_v32  ;;  %393 = vmatprep.subr.mxu1 %v392_v29 }
  0x41   : > { %486 = vmatprep.subr.mxu0 %v1354_v33  ;;  %399 = vmatpush1.msra.mxu1 %v398_v36 }
  0x42   : > { %489 = vmatpush1.msra.mxu0 %v1361_v37  ;;  %405 = vmatprep.subr.mxu1 %v404_v38 }
  0x43   : > { %492 = vmatprep.subr.mxu0 %v1380_v45  ;;  %411 = vmatpush1.msra.mxu1 %v410_v42 }
  0x44   : > { %495 = vmatpush1.msra.mxu0 %v1400_v57  ;;  %446 = vmatmul.mubr.f32.vlgmr.msra.gmra.mxu1 %v1369_v41 }
  0x45   : > { %498 = vmatprep.subr.mxu0 %v1407_v60  ;;  %570 = vmatprep.subr.mxu1 %v1298_v5 }
  0x46   : > { %501 = vmatpush1.msra.mxu0 %v1410_v61  ;;  %572 = vmatpush1.msra.mxu1 %v1300_v6 }
  0x47   : > { %504 = vmatprep.subr.mxu0 %v1418_v1  ;;  %574 = vmatprep.subr.mxu1 %v1302_v7 }
  0x48   : > { %507 = vmatpush1.msra.mxu0 %v1421_v2  ;;  %576 = vmatpush1.msra.mxu1 %v1307_v11 }
  0x49   : > { %543 = vmatmul.mubr.f32.vlgmr.msra.gmra.mxu0 %v1390_v49  ;;  %578 = vmatprep.subr.mxu1 %v1309_v12 }
  0x4a   : > { %658 = vmatprep.subr.mxu0 %v342_v30  ;;  %580 = vmatpush1.msra.mxu1 %v1311_v13 }
  0x4b   : > { %662 = vmatpush1.msra.mxu0 %v348_v34  ;;  %582 = vmatprep.subr.mxu1 %v1317_v17 }
  0x4c   : > { %666 = vmatprep.subr.mxu0 %v354_v35  ;;  %584 = vmatpush1.msra.mxu1 %v1319_v18 }
  0x4d   : > { %670 = vmatpush1.msra.mxu0 %v360_v39  ;;  %586 = vmatprep.subr.mxu1 %v1321_v19 }
  0x4e   : > { %674 = vmatprep.subr.mxu0 %v366_v40  ;;  %588 = vmatpush1.msra.mxu1 %v1330_v24 }
  0x4f   : > { %678 = vmatpush1.msra.mxu0 %v372_v44  ;;  %590 = vmatprep.subr.mxu1 %v1335_v26 }
  0x50   : > { %682 = vmatprep.subr.mxu0 %v378_v53  ;;  %592 = vmatpush1.msra.mxu1 %v1348_v31 }
  0x51   : > { %625 = vmatprep.mubr.f32.mxu1 %v1176_v0  ;;  %686 = vmatpush1.msra.mxu0 %v384_v63 }
  0x52   : > { %629 = vmatmul.mubr.f32.vlgmr.msra.gmra.mxu1 %v311_v56  ;;  %690 = vmatprep.subr.mxu0 %v390_v4 }
  0x53   : > { %764 = vmatprep.subr.mxu1 %v1298_v5  ;;  %694 = vmatpush1.msra.mxu0 %v396_v8 }
  0x54   : > { %766 = vmatpush1.msra.mxu1 %v1300_v6  ;;  %698 = vmatprep.subr.mxu0 %v402_v14 }
  0x55   : > { %768 = vmatprep.subr.mxu1 %v1302_v7  ;;  %702 = vmatpush1.msra.mxu0 %v408_v15 }
  0x56   : > { %735 = vmatprep.mubr.f32.mxu0 %v1176_v0  ;;  %770 = vmatpush1.msra.mxu1 %v1307_v11 }
  0x57   : > { %737 = vmatmul.mubr.f32.vlgmr.msra.gmra.mxu0 %v1369_v41  ;;  %772 = vmatprep.subr.mxu1 %v1309_v12 }
  0x58   : > { %774 = vmatpush1.msra.mxu1 %v1311_v13  ;;  %819 = vmatprep.mubr.f32.mxu1 %v1176_v0 }
  0x59   : > { %776 = vmatprep.subr.mxu1 %v1317_v17 }
  0x5a   : > { %778 = vmatpush1.msra.mxu1 %v1319_v18 }
  0x5b   : > { %780 = vmatprep.subr.mxu1 %v1321_v19 }
  0x5c   : > { %782 = vmatpush1.msra.mxu1 %v1330_v24 }
  0x5d   : > { %784 = vmatprep.subr.mxu1 %v1335_v26 }
  0x5e   : > { %786 = vmatpush1.msra.mxu1 %v1348_v31 }
  0x5f   : > { %821 = vmatmul.mubr.f32.vlgmr.msra.gmra.mxu1 %v1369_v41 }
  0xae   : > { %v226_v6 = vpop.permute.xlu0 %225 }
  0xfd   : > { %v315_v5 = vpop.f32.mrf.mxu0 }
  0xfe   : > { %v316_v12 = vadd.f32 %v315_v5, %v226_v6 }
  0xff   : > { %v317_v7 = vpop.f32.mrf.mxu0 }
 0x100   : > { %v318_v17 = vadd.f32 %v317_v7, %v226_v6 }
 0x104   : > { %v447_v11 = vpop.f32.mrf.mxu1 }
 0x105   : > { %v448_v20 = vadd.f32 %v447_v11, %v316_v12 }
 0x106   : > { %v449_v13 = vpop.f32.mrf.mxu1 }
 0x107   : > { %v450_v27 = vadd.f32 %v449_v13, %v318_v17 }
 0x109   : > { %v544_v0 = vpop.f32.mrf.mxu0 }
 0x10a   : > { %v545_v24 = vadd.f32 %v544_v0, %v448_v20 }
 0x10b   : > { %v546_v18 = vpop.f32.mrf.mxu0 }
 0x10c   : > { %v547_v26 = vadd.f32 %v546_v18, %v450_v27 }
 0x112   : > { %v630_v25 = vpop.f32.mrf.mxu1 }
 0x113   : > { %v631_v32 = vadd.f32 %v630_v25, %v545_v24 }
 0x114   : > { %v632_v30 = vpop.f32.mrf.mxu1 }
 0x115   : > { %v633_v33 = vadd.f32 %v632_v30, %v547_v26 }
 0x117   : > { %v738_v19 = vpop.f32.mrf.mxu0 }
 0x118   : > { %v739_v34 = vadd.f32 %v738_v19, %v631_v32 }
 0x119   : > { %v740_v31 = vpop.f32.mrf.mxu0 }
 0x11a   : > { %v741_v37 = vadd.f32 %v740_v31, %v633_v33 }
 0x11f   : > { %v822_v35 = vpop.f32.mrf.mxu1 }
 0x120   : > { %v823_v39 = vadd.f32 %v822_v35, %v739_v34 }
 0x121   : > { %v824_v40 = vpop.f32.mrf.mxu1 }
 0x122   : > { %v828_v41 = vsel %vm827_vm1, %v823_v39, -inf  ;;  %v825_v43 = vadd.f32 %v824_v40, %v741_v37 }
 0x123   : > { %v829_v44 = vrot.slane %v828_v41, 4 }
 0x124   : > { %v835_v45 = vsel %vm827_vm1, %v825_v43, -inf }
 0x125   : > { %v830_v46 = vmax.f32 %v828_v41, %v829_v44  ;;  %v836_v47 = vrot.slane %v835_v45, 4 }
 0x127   : > { %v831_v48 = vrot.slane %v830_v46, 2  ;;  %v837_v49 = vmax.f32 %v835_v45, %v836_v47 }
 0x129   : > { %v832_v50 = vmax.f32 %v830_v46, %v831_v48  ;;  %v838_v51 = vrot.slane %v837_v49, 2 }
 0x12b   : > { %v833_v52 = vrot.slane %v832_v50, 1  ;;  %v839_v53 = vmax.f32 %v837_v49, %v838_v51 }
 0x12d   : > { %v834_v54 = vmax.f32 %v832_v50, %v833_v52  ;;  %v840_v55 = vrot.slane %v839_v53, 1 }
 0x12f   : > { %v842_v56 = vsub.f32 %v823_v39, %v834_v54  ;;  %v841_v57 = vmax.f32 %v839_v53, %v840_v55 }
 0x131   : > { %v844_v58 = vmul.f32 1.442695, %v842_v56  ;;  %v843_v59 = vsub.f32 %v825_v43, %v841_v57 }
 0x133   : > { %1055 = vpow2.f32 %v844_v58  ;;  %v846_v60 = vmul.f32 1.442695, %v843_v59 }
 0x135   : > { %1057 = vpow2.f32 %v846_v60 }
 0x140   : > { %v1056_v61 = vpop.eup %1055 }
 0x141   : > { %v848_v62 = vsel %vm827_vm1, %v1056_v61, 0.0 }
 0x142   : > { %v1058_v63 = vpop.eup %1057  ;;  %v849_v1 = vrot.slane %v848_v62, 4 }
 0x143   : > { %v855_v2 = vsel %vm827_vm1, %v1058_v63, 0.0 }
 0x144   : > { %v850_v3 = vadd.f32 %v849_v1, %v848_v62  ;;  %v856_v4 = vrot.slane %v855_v2, 4 }
 0x146   : > { %v851_v8 = vrot.slane %v850_v3, 2  ;;  %v857_v9 = vadd.f32 %v856_v4, %v855_v2 }
 0x148   : > { %v852_v10 = vadd.f32 %v851_v8, %v850_v3  ;;  %v858_v14 = vrot.slane %v857_v9, 2 }
 0x14a   : > { %v853_v15 = vrot.slane %v852_v10, 1  ;;  %v859_v16 = vadd.f32 %v858_v14, %v857_v9 }
 0x14c   : > { %v854_v21 = vadd.f32 %v853_v15, %v852_v10  ;;  %v860_v22 = vrot.slane %v859_v16, 1 }
 0x14e   : > { %1059 = vrcp.f32 %v854_v21  ;;  %v861_v23 = vadd.f32 %v860_v22, %v859_v16 }
 0x150   : > { %1061 = vrcp.f32 %v861_v23 }
 0x15b   : > { %v1060_v28 = vpop.eup %1059 }
 0x15c   : > { %v863_v36 = vmul.f32 %v1060_v28, %v1056_v61 }
 0x15d   : > { %v1062_v29 = vpop.eup %1061 }
 0x15e   : > { %v865_v38 = vmul.f32 %v1062_v29, %v1058_v63 }
 0x160   : > { %v868_v42 = vcombine.low %v863_v36, %v865_v38 }
 0x162   : > { %870 = vst [vmem:[%s206_s10] sm:$0xff] %v868_v42 }
 0x163   : > { %1104 = shalt.err (!%p1101_p6)
}
 0x164   : > { %s1105_s5 = scalar_lea.hbm %s886_s21, 128  ;;  %s1109_s4 = scalar_lea.hbm %s1545_s3, 256 }
 0x165   : > { %p1106_p4 = scmp.ne.s32.totalorder %s886_s21, %s1105_s5  ;;  %p1110_p13 = scmp.lt.s32.totalorder %s886_s21, %s1545_s3 }
 0x166   : > { %p1111_p2 = scmp.lt.s32.totalorder %s1109_s4, %s1105_s5 }
 0x167   : > { %p1107_p7 = pnand %p1106_p4, %p1250_p9 }
 0x168   : > { %p1112_p8 = por %p1111_p2, %p1110_p13 }
 0x169   : > { %p1108_p10 = pneg %p1107_p7 }
 0x16b   : > { %p1113_p12 = pnand %p1112_p8, %p1108_p10 }
 0x16d   : > { %1116 = shalt.err (!%p1113_p12)
}
 0x16e   : > { %990 = dma.vmem_to_hbm [thread:$0]  (%p1250_p9), %s889_s11, 128, %s886_s21, %s872_s22  }
 0x16f PF: > { %s900_s8 = sand.u32 1, %s1151_s12   ;;  %p1551_p0 = scmp.ge.s32.totalorder %s1171_s17, 2 }
 0x170   : > { %s901_s9 = scalar_lea.sflag [#allocation4], %s900_s8 }
 0x171   : > { %p997_p1 = pnand %p1551_p0, %p1257_p11 }
 0x173   : > { %p998_p3 = pneg %p997_p1 }
 0x175   : > { %1146 = dma.done.wait (%p998_p3), %s901_s9, 128  }
 0x176   : > { %1148 = vsyncadd (%p998_p3), %s901_s9, 4294967168  ;;  %s19_s17 = sadd.s32 1, %s1171_s17   ;;  %s1552_s12 = smov %s1155_s13 }
 0x177   : > { %p16_p5 = scmp.ge.s32.totalorder %s19_s17, 4   ;;  %s1553_s13 = smov %s1159_s14 }
 0x178   : > { %s1554_s14 = smov %s1255_s26  ;;  %s1555_s15 = smov %s1167_s16 }
 0x179   : > { %s1556_s16 = smov %s1558_s20  ;;  %18 = sbr.rel (!%p16_p5) target bundleno = 6 (0x6), region = 77 }
 0x17e   :  { %906 = vsyncpa [#allocation3], 1 }
 0x17f   :  { %908 = vsyncpa [#allocation3 + $0x1], 1 }
 0x180   :  { %909 = vsyncpa [#allocation4], 1 }
 0x181   :  { %911 = vsyncpa [#allocation4 + $0x1], 1 }

</bundles_post_ra>
